<compile_context>
chip_gen: v6e
topology: v6e:2x2x1
jax: 0.10.0
libtpu: 0.0.40
codegen_flags: <defaults>
</compile_context>

<pallas_src>
import functools

import jax
import jax.numpy as jnp
from jax.experimental import pallas as pl
from jax.experimental.pallas import tpu as pltpu


VMEM_LIMIT = 32 * 1024 * 1024  # conservative; fits v5e/v6e/v7x scoped VMEM


def _round_up(x, m):
    return ((x + m - 1) // m) * m


# ----------------------------- Pallas kernels -----------------------------

def _matmul_bias_kernel(p_ref, w_ref, b_ref, o_ref, *, relu):
    """out = act((P_bf16 @ W_bf16)_f32 + bias); bias broadcast over rows."""
    acc = jnp.dot(p_ref[...], w_ref[...], preferred_element_type=jnp.float32)
    y = acc + b_ref[...]
    if relu:
        y = jnp.maximum(y, 0.0)
    o_ref[...] = y.astype(o_ref.dtype)


def _softargmax_kernel(f_ref, pos_ref, o_ref):
    """Row-wise softmax over the spatial axis, then expected coordinates.

    Normalization is applied to the (rows, 2)-shaped numerator with an EUP
    approximate reciprocal instead of dividing the full probability matrix.
    """
    f = f_ref[...].astype(jnp.float32)
    m = jnp.max(f, axis=-1, keepdims=True)
    p = jnp.exp(f - m)
    l = jnp.sum(p, axis=-1, keepdims=True)
    num = jnp.dot(p, pos_ref[...], preferred_element_type=jnp.float32)
    o_ref[...] = num * pl.reciprocal(l, approx=True)


# ----------------------------- wrappers -----------------------------------

def fused_matmul_bias(patches, w, bias, relu, out_dtype, tm=256):
    """act((patches @ w) + bias), tiled over rows; bf16 MXU operands, f32 accum."""
    M, K = patches.shape
    Kw, C = w.shape
    assert K == Kw
    Cp = _round_up(C, 128)                    # lane-dense output stores
    TM = min(tm, _round_up(M, 8))
    Mp = _round_up(M, TM)

    p = patches.astype(jnp.bfloat16)
    if Mp != M:
        p = jnp.pad(p, ((0, Mp - M), (0, 0)))
    wp = jnp.pad(w, ((0, 0), (0, Cp - C))).astype(jnp.bfloat16)
    bp = jnp.pad(bias.reshape(1, C).astype(jnp.float32), ((0, 0), (0, Cp - C)))

    out = pl.pallas_call(
        functools.partial(_matmul_bias_kernel, relu=relu),
        out_shape=jax.ShapeDtypeStruct((Mp, Cp), out_dtype),
        grid=(Mp // TM,),
        in_specs=[
            pl.BlockSpec((TM, K), lambda i: (i, 0)),     # streamed patch tiles
            pl.BlockSpec((K, Cp), lambda i: (0, 0)),     # resident weights
            pl.BlockSpec((1, Cp), lambda i: (0, 0)),     # resident bias
        ],
        out_specs=pl.BlockSpec((TM, Cp), lambda i: (i, 0)),
        compiler_params=pltpu.CompilerParams(
            dimension_semantics=("parallel",),
            vmem_limit_bytes=VMEM_LIMIT,
        ),
    )(p, wp, bp)
    return out[:M, :C]


def _im2col(x, kh, kw, stride):
    """x: (N, H, W, C) NHWC, VALID conv -> patches (N*Hout*Wout, kh*kw*C)."""
    N, H, W, C = x.shape
    Hout = (H - kh) // stride + 1
    Wout = (W - kw) // stride + 1
    cols = []
    for i in range(kh):
        for j in range(kw):
            cols.append(x[:, i:i + stride * Hout:stride, j:j + stride * Wout:stride, :])
    p = jnp.stack(cols, axis=3)  # (N, Hout, Wout, kh*kw, C)
    return p.reshape(N * Hout * Wout, kh * kw * C), Hout, Wout


def conv2d_bn_relu(x, w_folded, bias, stride, relu, out_dtype):
    """VALID NHWC conv (im2col) with folded BN (weights pre-scaled) + bias + ReLU."""
    kh, kw, cin, cout = w_folded.shape
    patches, Hout, Wout = _im2col(x, kh, kw, stride)
    out = fused_matmul_bias(patches, w_folded.reshape(kh * kw * cin, cout),
                            bias, relu, out_dtype)
    return out.reshape(x.shape[0], Hout, Wout, cout)


def spatial_softargmax(feat):
    """feat: (N, H, W, C) -> (N, C, 2); expected coords (x, y) in [-1, 1]."""
    N, H, W, C = feat.shape
    f = feat.reshape(N, H * W, C).transpose(0, 2, 1).reshape(N * C, H * W)
    f = f.astype(jnp.float32)

    ys = jnp.linspace(-1.0, 1.0, H, dtype=jnp.float32)
    xs = jnp.linspace(-1.0, 1.0, W, dtype=jnp.float32)
    pos_x = jnp.tile(xs, H)        # index s = h*W + w -> xs[w]
    pos_y = jnp.repeat(ys, W)      #                   -> ys[h]
    pos = jnp.stack([pos_x, pos_y], axis=-1)  # (H*W, 2)

    BC, HW = f.shape
    TB = min(256, _round_up(BC, 8))
    BCp = _round_up(BC, TB)
    OP = 128                       # lane-dense output / MXU N dim
    if BCp != BC:
        f = jnp.pad(f, ((0, BCp - BC), (0, 0)))
    posp = jnp.pad(pos, ((0, 0), (0, OP - 2)))

    out = pl.pallas_call(
        _softargmax_kernel,
        out_shape=jax.ShapeDtypeStruct((BCp, OP), jnp.float32),
        grid=(BCp // TB,),
        in_specs=[
            pl.BlockSpec((TB, HW), lambda i: (i, 0)),
            pl.BlockSpec((HW, OP), lambda i: (0, 0)),
        ],
        out_specs=pl.BlockSpec((TB, OP), lambda i: (i, 0)),
        compiler_params=pltpu.CompilerParams(
            dimension_semantics=("parallel",),
            vmem_limit_bytes=VMEM_LIMIT,
        ),
    )(f, posp)
    return out[:BC, :2].reshape(N, C, 2)


# ----------------------------- parameters ----------------------------------

def _make_layer(key, k, cin, cout, stride):
    """Conv (no bias, as in the module with batch_norm=True) + eval-mode BN, folded."""
    w_key, g_key, be_key, m_key, v_key = jax.random.split(key, 5)
    w = jax.random.normal(w_key, (k, k, cin, cout), jnp.float32) / jnp.sqrt(k * k * cin)
    eps = 1e-5
    gamma = 1.0 + 0.1 * jax.random.normal(g_key, (cout,), jnp.float32)
    beta = 0.1 * jax.random.normal(be_key, (cout,), jnp.float32)
    running_mean = 0.1 * jax.random.normal(m_key, (cout,), jnp.float32)
    running_var = 1.0 + 0.1 * jax.random.uniform(v_key, (cout,), jnp.float32)
    scale = gamma / jnp.sqrt(running_var + eps)
    w_folded = w * scale[None, None, None, :]          # BN scale folded into weights
    bias = beta - running_mean * scale                  # eval-mode BN bias
    return dict(w=w_folded, bias=bias, stride=stride)


def init_encoder_dsae_params(key, n_coordinates=16, out_channels=(64, 32),
                             kernel_sizes=(7, 5, 5)):
    k1, k2, k3 = kernel_sizes
    cfgs = [
        (k1, 3, out_channels[0], 2),                 # conv1, stride 2
        (k2, out_channels[0], out_channels[1], 1),   # conv2
        (k3, out_channels[1], n_coordinates, 1),     # conv3
    ]
    keys = jax.random.split(key, len(cfgs))
    return [_make_layer(kk, k, ci, co, s) for kk, (k, ci, co, s) in zip(keys, cfgs)]


def encoder_dsae_forward(x_nchw, layers, softmax_temperature=1.0):
    """x_nchw: (N, 3, H, W) -> (N, n_coordinates, 2) with coords (x, y) in [-1, 1]."""
    x = jnp.transpose(x_nchw, (0, 2, 3, 1)).astype(jnp.bfloat16)  # NCHW -> NHWC, bf16
    inv_t = 1.0 / float(softmax_temperature)
    n_layers = len(layers)
    for idx, lyr in enumerate(layers):
        last = idx == n_layers - 1
        w, b = lyr["w"], lyr["bias"]
        if last:
            # Fold 1/temperature into the last conv (ReLU is positively homogeneous),
            # so the softargmax kernel needs no extra scaling.
            w = w * inv_t
            b = b * inv_t
        out_dtype = jnp.float32 if last else jnp.bfloat16
        x = conv2d_bn_relu(x, w, b, lyr["stride"], relu=True, out_dtype=out_dtype)
    return spatial_softargmax(x)


# ----------------------------- main -----------------------------------------

if __name__ == "__main__":
    key = jax.random.PRNGKey(0)
    pkey, xkey = jax.random.split(key)

    n_coordinates = 16
    layers = init_encoder_dsae_params(pkey, n_coordinates=n_coordinates,
                                      out_channels=(64, 32), kernel_sizes=(7, 5, 5))

    # NCHW RGB input; 32x32 so the three VALID convs (7/s2, 5, 5) leave a 5x5 map.
    x = jax.random.normal(xkey, (2, 3, 32, 32), jnp.float32)

    out = encoder_dsae_forward(x, layers, softmax_temperature=1.0)
    out = jax.block_until_ready(out)

    assert out.shape == (2, n_coordinates, 2), out.shape
    assert bool(jnp.all(jnp.isfinite(out)))
    # coords in [-1, 1]; small slack for the approximate-reciprocal normalization
    assert bool(jnp.all(jnp.abs(out) <= 1.0 + 1e-2))
    print("KERNEL_OK")
</pallas_src>

<mosaic_0001>
module attributes {stable_mosaic.version = 11 : i64} {
  func.func @_matmul_bias_kernel(%arg0: i32, %arg1: memref<256x147xbf16, #tpu.memory_space<vmem>>, %arg2: memref<147x128xbf16, #tpu.memory_space<vmem>>, %arg3: memref<1x128xf32, #tpu.memory_space<vmem>>, %arg4: memref<256x128xbf16, #tpu.memory_space<vmem>>) attributes {dimension_semantics = [#tpu.dimension_semantics<parallel>], iteration_bounds = array<i64: 2>, scalar_prefetch = 0 : i64, scratch_operands = 0 : i64, tpu.core_type = #tpu.core_type<tc>, window_params = [{transform_indices = @transform_0, window_bounds = array<i64: 256, 147>}, {pipeline_mode = #tpu.pipeline_mode<synchronous>, transform_indices = @transform_1, window_bounds = array<i64: 147, 128>}, {pipeline_mode = #tpu.pipeline_mode<synchronous>, transform_indices = @transform_2, window_bounds = array<i64: 1, 128>}, {transform_indices = @transform_3, window_bounds = array<i64: 256, 128>}]} {
    %c0 = arith.constant 0 : index
    %c0_0 = arith.constant 0 : index
    %0 = vector.load %arg1[%c0, %c0_0] : memref<256x147xbf16, #tpu.memory_space<vmem>>, vector<256x147xbf16>
    %c0_1 = arith.constant 0 : index
    %c0_2 = arith.constant 0 : index
    %1 = vector.load %arg2[%c0_1, %c0_2] : memref<147x128xbf16, #tpu.memory_space<vmem>>, vector<147x128xbf16>
    %cst = arith.constant dense<0.000000e+00> : vector<256x128xf32>
    %2 = tpu.matmul %0, %1, %cst {dimension_numbers = #tpu.dot_dimension_numbers<[1], [0], [0], [1], [0, 0, 1, 1], [], []>} : vector<256x147xbf16>, vector<147x128xbf16>, vector<256x128xf32> -> vector<256x128xf32>
    %c0_3 = arith.constant 0 : index
    %c0_4 = arith.constant 0 : index
    %3 = vector.load %arg3[%c0_3, %c0_4] : memref<1x128xf32, #tpu.memory_space<vmem>>, vector<1x128xf32>
    %4 = vector.broadcast %3 : vector<1x128xf32> to vector<256x128xf32>
    %5 = arith.addf %2, %4 : vector<256x128xf32>
    %cst_5 = arith.constant 0.000000e+00 : f32
    %6 = vector.broadcast %cst_5 : f32 to vector<256x128xf32>
    %7 = arith.maximumf %5, %6 : vector<256x128xf32>
    %8 = arith.truncf %7 : vector<256x128xf32> to vector<256x128xbf16>
    %c0_6 = arith.constant 0 : index
    %c0_7 = arith.constant 0 : index
    %9 = vector.load %arg4[%c0_6, %c0_7] : memref<256x128xbf16, #tpu.memory_space<vmem>>, vector<256x128xbf16>
    tpu.vector_store %arg4[%c0_6, %c0_7], %8 {strides = array<i32>} : memref<256x128xbf16, #tpu.memory_space<vmem>>, vector<256x128xbf16>,
    return
  }
  func.func @transform_0(%arg0: i32) -> (i32, i32) {
    %c0_i32 = arith.constant 0 : i32
    %c0_i32_0 = arith.constant 0 : i32
    return %arg0, %c0_i32 : i32, i32
  }
  func.func @transform_1(%arg0: i32) -> (i32, i32) {
    %c0_i32 = arith.constant 0 : i32
    %c0_i32_0 = arith.constant 0 : i32
    %c0_i32_1 = arith.constant 0 : i32
    return %c0_i32, %c0_i32_0 : i32, i32
  }
  func.func @transform_2(%arg0: i32) -> (i32, i32) {
    %c0_i32 = arith.constant 0 : i32
    %c0_i32_0 = arith.constant 0 : i32
    %c0_i32_1 = arith.constant 0 : i32
    return %c0_i32, %c0_i32_0 : i32, i32
  }
  func.func @transform_3(%arg0: i32) -> (i32, i32) {
    %c0_i32 = arith.constant 0 : i32
    %c0_i32_0 = arith.constant 0 : i32
    return %arg0, %c0_i32 : i32, i32
  }
}

</mosaic_0001>

<bundles_post_ra>
// kernel: tpu_custom_call.1
= control target key start
LH: loop header
LB: loop body
LE: loop exit
PB: predicated region body
PF: predicated region fallthrough
CT: control target
= control target key end

     0   :  { %8 = vsyncpa [#allocation3], 0  ;;  %s1602_s0 = inlined_call_operand.vmem [shape: bf16[512,147], index: 0, kind: input, shape index: {}]   ;;  %s1603_s1 = inlined_call_operand.vmem [shape: bf16[147,128], index: 1, kind: input, shape index: {}]   ;;  %s1604_s2 = inlined_call_operand.vmem [shape: f32[1,128], index: 2, kind: input, shape index: {}]   ;;  %s1605_s3 = inlined_call_operand.hbm [shape: bf16[512,128], index: 3, kind: output, shape index: {}]  }
   0x1   :  { %10 = vsyncpa [#allocation3 + $0x1], 0  ;;  %s1361_s12 = smov 0   ;;  %s1363_s13 = smov 0  }
   0x2   :  { %s1365_s14 = smov 0   ;;  %s1367_s15 = smov 0  }
   0x3 LB: > { %s1382_s16 = sadd.s32 4294967295, %s1334_s15   ;;  %s920_s17 = sadd.s32 4294967294, %s1334_s15   ;;  %s1334_s15 = sphi %s1367_s15, %s1611_s15   ;;  %s1330_s14 = sphi %s1365_s14, %s1610_s14   ;;  %s1326_s13 = sphi %s1363_s13, %s1609_s13   ;;  %s1322_s12 = sphi %s1361_s12, %s1608_s12  }
   0x4   : > { %s1386_s18 = sadd.s32 1, %s1334_s15   ;;  %s91_s19 = sadd.s32 1, %s1330_s14 }
   0x5   : > { %s88_s20 = ssub.s32 %s1334_s15, %s1386_s18  ;;  %p101_p0 = scmp.ne.s32.totalorder %s1330_s14, %s1326_s13 }
   0x6   : > { %p89_p1 = scmp.eq.s32.totalorder %s88_s20, 0  ;;  %p102_p2 = scmp.eq.s32.totalorder %s1382_s16, 1 }
   0x7   : > { %p107_p3 = scmp.ne.s32.totalorder %s1326_s13, %s1322_s12  ;;  %p108_p4 = scmp.eq.s32.totalorder %s920_s17, 1 }
   0x8   : > { %s1397_s21 = scalar_select %p89_p1, %s1330_s14, %s91_s19  }
   0x9   : > { %p1399_p5 = por %p102_p2, %p101_p0  ;;  %p1403_p6 = por %p108_p4, %p107_p3 }
   0xa   : > { %p923_p7 = scmp.ge.s32.totalorder %s1334_s15, 1  ;;  %p142_p8 = scmp.lt.s32.totalorder %s1334_s15, 3 }
   0xc   : > { %p143_p9 = pnand %p923_p7, %p142_p8 }
   0xd   : > { %s925_s30 = sshll.u32 (!%p143_p9), %s1382_s16, 5  ;;  %s1338_s24 = smov (!%p143_p9), [#allocation2]  }
   0xe   : > { %146 = sbr.rel (%p143_p9) target bundleno = 333 (0x14d), region = 32  ;;  %p168_p10 = scmp.lt.s32.totalorder (!%p143_p9), %s925_s30, 63 }
   0xf   : > { %s1278_s25 = sshll.u32 (!%p143_p9), %s1338_s24, 4  ;;  %s1279_s25 = int_to_ptr.vmem [resolvable:$false] %s1278_s25 }
  0x10   : > { %s1280_s26 = scalar_lea.vmem (!%p143_p9), %s1279_s25, 4096 }
  0x13   : > { %v1216_v0 = vld [vmem:[%s1603_s1 + $0x38] sm:$0xff]   ;;  %v1336_v1 = vmov 0   ;;  %v1217_v2 = vld [vmem:[%s1603_s1 + $0x30] sm:$0xff]   ;;  %v1218_v3 = vld [vmem:[%s1603_s1 + $0x28] sm:$0xff]   ;;  %s1613_s30 = smov (!%p168_p10, %s925_s30), 63  ;;  %vm435_vm0 = vcmask 154624  }
  0x14   : > { %491 = vmatprep.subr.bf16.mxu0 %v1336_v1  ;;  %1153 = vmatprep.subr.bf16.mxu1 %v1336_v1  ;;  %v1219_v4 = vld [vmem:[%s1603_s1 + $0x20] sm:$0xff]   ;;  %s1024_s6 = sshll.u32 %s1613_s30, 3  ;;  %v1220_v5 = vld [vmem:[%s1603_s1 + $0x18] sm:$0xff]   ;;  %v1221_v8 = vld [vmem:[%s1603_s1 + $0x10] sm:$0xff]   ;;  %vm484_vm1 = vcmask 1040384   ;;  %vm485_vm2 = vcmask 1041408  }
  0x15   : > { %492 = vmatpush1.bf16.msra.mxu0 %v1216_v0  ;;  %1163 = vmatpush1.bf16.msra.mxu1 %v1216_v0  ;;  %s1425_s9 = scalar_lea.vmem %s1602_s0, %s1024_s6  ;;  %v1222_v9 = vld [vmem:[%s1603_s1 + $0x8] sm:$0xff]   ;;  %v1337_v10 = vmov 65535   ;;  %v1223_v12 = vld [vmem:[%s1603_s1] sm:$0xff]   ;;  %s164_s6 = sand.u32 1, %s1326_s13  }
  0x16   : > { %493 = vmatprep.subr.bf16.mxu0 %v1336_v1  ;;  %1154 = vmatprep.subr.bf16.mxu1 %v1336_v1  ;;  %v1228_v6 = vld [vmem:[%s1425_s9 + $0x4] ss:$8 sps:$4 sm:$0xff]   ;;  %v486_v11 = vsel %vm484_vm1, 4294967295, %v1337_v10  ;;  %v1224_v13 = vld [vmem:[%s1603_s1 + $0x48] ss:$0 sps:$4 sm:$0x33]  }
  0x17   : > { %v1231_v7 = vld [vmem:[%s1425_s9 + $0x84] ss:$8 sps:$4 sm:$0xff]   ;;  %971 = vmatprep.mubr.msk.bf16.mxu0 %vm435_vm0, %v1228_v6  ;;  %v487_v14 = vsel %vm485_vm2, %v486_v11, 0  ;;  %v1226_v17 = vld [vmem:[%s1425_s9] ss:$8 sps:$4 sm:$0xff]   ;;  %s924_s7 = sshll.u32 %s164_s6, 7 }
  0x18   : > { %979 = vmatprep.mubr.msk.bf16.mxu1 %vm435_vm0, %v1231_v7  ;;  %v489_v15 = vand.u32 %v1224_v13, %v487_v14  ;;  %v1225_v16 = vld [vmem:[%s1603_s1 + $0x40] sm:$0xff]   ;;  %v1232_v19 = vld [vmem:[%s1425_s9 + $0x14] ss:$8 sps:$4 sm:$0xff]   ;;  %v1236_v21 = vld [vmem:[%s1425_s9 + $0x10] ss:$8 sps:$4 sm:$0xff]   ;;  %s1505_s8 = scalar_lea.vmem [#allocation2], %s924_s7 }
  0x19   : > { %494 = vmatpush1.bf16.msra.mxu0 %v1217_v2  ;;  %1164 = vmatpush1.bf16.msra.mxu1 %v1217_v2  ;;  %v1229_v18 = vld [vmem:[%s1425_s9 + $0x80] ss:$8 sps:$4 sm:$0xff]   ;;  %v1234_v20 = vld [vmem:[%s1425_s9 + $0x94] ss:$8 sps:$4 sm:$0xff]   ;;  %v1237_v22 = vld [vmem:[%s1425_s9 + $0x90] ss:$8 sps:$4 sm:$0xff]  }
  0x1a   : > { %495 = vmatprep.subr.bf16.mxu0 %v1336_v1  ;;  %1155 = vmatprep.subr.bf16.mxu1 %v1336_v1  ;;  %v1238_v23 = vld [vmem:[%s1425_s9 + $0x24] ss:$8 sps:$4 sm:$0xff]   ;;  %v1242_v25 = vld [vmem:[%s1425_s9 + $0x20] ss:$8 sps:$4 sm:$0xff]   ;;  %v1244_v27 = vld [vmem:[%s1425_s9 + $0x34] ss:$8 sps:$4 sm:$0xff]  }
  0x1b   : > { %v1240_v24 = vld [vmem:[%s1425_s9 + $0xa4] ss:$8 sps:$4 sm:$0xff]   ;;  %v1243_v26 = vld [vmem:[%s1425_s9 + $0xa0] ss:$8 sps:$4 sm:$0xff]   ;;  %v1246_v28 = vld [vmem:[%s1425_s9 + $0xb4] ss:$8 sps:$4 sm:$0xff]  }
  0x1c   : > { %v1248_v29 = vld [vmem:[%s1425_s9 + $0x30] ss:$8 sps:$4 sm:$0xff]   ;;  %v1250_v31 = vld [vmem:[%s1425_s9 + $0x44] ss:$8 sps:$4 sm:$0xff]   ;;  %v1254_v33 = vld [vmem:[%s1425_s9 + $0x40] ss:$8 sps:$4 sm:$0xff]  }
  0x1d   : > { %496 = vmatpush1.bf16.msra.mxu0 %v1218_v3  ;;  %1165 = vmatpush1.bf16.msra.mxu1 %v1218_v3  ;;  %v1249_v30 = vld [vmem:[%s1425_s9 + $0xb0] ss:$8 sps:$4 sm:$0xff]   ;;  %v1252_v32 = vld [vmem:[%s1425_s9 + $0xc4] ss:$8 sps:$4 sm:$0xff]   ;;  %v1255_v34 = vld [vmem:[%s1425_s9 + $0xc0] ss:$8 sps:$4 sm:$0xff]  }
  0x1e   : > { %497 = vmatprep.subr.bf16.mxu0 %v1336_v1  ;;  %1156 = vmatprep.subr.bf16.mxu1 %v1336_v1  ;;  %v1256_v35 = vld [vmem:[%s1425_s9 + $0x54] ss:$8 sps:$4 sm:$0xff]   ;;  %v1260_v37 = vld [vmem:[%s1425_s9 + $0x50] ss:$8 sps:$4 sm:$0xff]   ;;  %v1262_v39 = vld [vmem:[%s1425_s9 + $0x64] ss:$8 sps:$4 sm:$0xff]  }
  0x1f   : > { %v1258_v36 = vld [vmem:[%s1425_s9 + $0xd4] ss:$8 sps:$4 sm:$0xff]   ;;  %v1261_v38 = vld [vmem:[%s1425_s9 + $0xd0] ss:$8 sps:$4 sm:$0xff]   ;;  %v1264_v40 = vld [vmem:[%s1425_s9 + $0xe4] ss:$8 sps:$4 sm:$0xff]  }
  0x20   : > { %v1266_v41 = vld [vmem:[%s1425_s9 + $0x60] ss:$8 sps:$4 sm:$0xff]   ;;  %v1268_v43 = vld [vmem:[%s1425_s9 + $0x74] ss:$8 sps:$4 sm:$0xff]   ;;  %v1272_v45 = vld [vmem:[%s1425_s9 + $0x70] ss:$8 sps:$4 sm:$0xff]  }
  0x21   : > { %498 = vmatpush1.bf16.msra.mxu0 %v1219_v4  ;;  %1166 = vmatpush1.bf16.msra.mxu1 %v1219_v4  ;;  %v1267_v42 = vld [vmem:[%s1425_s9 + $0xe0] ss:$8 sps:$4 sm:$0xff]   ;;  %v1270_v44 = vld [vmem:[%s1425_s9 + $0xf4] ss:$8 sps:$4 sm:$0xff]   ;;  %v1273_v46 = vld [vmem:[%s1425_s9 + $0xf0] ss:$8 sps:$4 sm:$0xff]  }
  0x22   : > { %499 = vmatprep.subr.bf16.mxu0 %v1336_v1  ;;  %1157 = vmatprep.subr.bf16.mxu1 %v1336_v1  ;;  %v1496_v47 = vld [vmem:[%s1604_s2] ss:$0 sm:$0xff]  ;;  %s1057_s9 = sshll.u32 %s1382_s16, 11  ;;  %s858_s10 = sshll.u32 %s1505_s8, 4  ;;  %s1556_s10 = int_to_ptr.vmem [resolvable:$true] %s858_s10 }
  0x23   : > { %s1554_s19 = scalar_lea.hbm %s1605_s3, %s1057_s9  ;;  %s1562_s16 = scalar_lea.sflag [#allocation3], %s164_s6 }
  0x24   : > { %s1274_s20 = scalar_lea.vmem %s1556_s10, 2048  ;;  %p1281_p0 = scmp.lt.s32.totalorder %s1556_s10, %s1279_s25 }
  0x25   : > { %500 = vmatpush1.bf16.msra.mxu0 %v1220_v5  ;;  %1167 = vmatpush1.bf16.msra.mxu1 %v1220_v5  ;;  %p1275_p11 = scmp.ne.s32.totalorder %s1556_s10, %s1274_s20  ;;  %p1282_p1 = scmp.lt.s32.totalorder %s1280_s26, %s1274_s20 }
  0x26   : > { %501 = vmatprep.subr.bf16.mxu0 %v1336_v1  ;;  %1158 = vmatprep.subr.bf16.mxu1 %v1336_v1 }
  0x27   : > { %p1276_p12 = pnand %p1275_p11, %p1399_p5  ;;  %p1283_p2 = por %p1282_p1, %p1281_p0 }
  0x29   : > { %502 = vmatpush1.bf16.msra.mxu0 %v1221_v8  ;;  %1168 = vmatpush1.bf16.msra.mxu1 %v1221_v8  ;;  %p1277_p13 = pneg %p1276_p12 }
  0x2a   : > { %503 = vmatprep.subr.bf16.mxu0 %v1336_v1  ;;  %1159 = vmatprep.subr.bf16.mxu1 %v1336_v1 }
  0x2b   : > { %p1284_p3 = pnand %p1283_p2, %p1277_p13 }
  0x2d   : > { %504 = vmatpush1.bf16.msra.mxu0 %v1222_v9  ;;  %1169 = vmatpush1.bf16.msra.mxu1 %v1222_v9 }
  0x2e   : > { %505 = vmatprep.subr.bf16.mxu0 %v1336_v1  ;;  %1160 = vmatprep.subr.bf16.mxu1 %v1336_v1 }
  0x31   : > { %506 = vmatpush1.bf16.msra.mxu0 %v1223_v12  ;;  %1170 = vmatpush1.bf16.msra.mxu1 %v1223_v12 }
  0x32   : > { %519 = vmatprep.subr.bf16.mxu0 %v1336_v1  ;;  %1161 = vmatprep.subr.bf16.mxu1 %v1336_v1 }
  0x35   : > { %520 = vmatpush2.bf16.msra.mxu0 %v489_v15  ;;  %1171 = vmatpush2.bf16.msra.mxu1 %v489_v15 }
  0x36   : > { %521 = vmatprep.subr.bf16.mxu0 %v1336_v1  ;;  %1162 = vmatprep.subr.bf16.mxu1 %v1336_v1 }
  0x39   : > { %522 = vmatpush2.bf16.msra.mxu0 %v1225_v16  ;;  %1172 = vmatpush2.bf16.msra.mxu1 %v1225_v16 }
  0x3c   : > { %524 = vmatmul.mubr.bf16.vlgmr.msra.gmra.mxu0 %v1226_v17  ;;  %588 = vmatmul.mubr.bf16.vlgmr.msra.gmra.mxu1 %v1229_v18 }
  0x3d   : > { %972 = vmatprep.mubr.msk.bf16.mxu0 %vm435_vm0, %v1232_v19  ;;  %980 = vmatprep.mubr.msk.bf16.mxu1 %vm435_vm0, %v1234_v20 }
  0x44   : > { %532 = vmatmul.mubr.bf16.gmra.mxu0 %v1236_v21  ;;  %596 = vmatmul.mubr.bf16.gmra.mxu1 %v1237_v22 }
  0x45   : > { %973 = vmatprep.mubr.msk.bf16.mxu0 %vm435_vm0, %v1238_v23  ;;  %981 = vmatprep.mubr.msk.bf16.mxu1 %vm435_vm0, %v1240_v24 }
  0x4c   : > { %540 = vmatmul.mubr.bf16.gmra.mxu0 %v1242_v25  ;;  %604 = vmatmul.mubr.bf16.gmra.mxu1 %v1243_v26 }
  0x4d   : > { %974 = vmatprep.mubr.msk.bf16.mxu0 %vm435_vm0, %v1244_v27  ;;  %982 = vmatprep.mubr.msk.bf16.mxu1 %vm435_vm0, %v1246_v28 }
  0x54   : > { %548 = vmatmul.mubr.bf16.gmra.mxu0 %v1248_v29  ;;  %612 = vmatmul.mubr.bf16.gmra.mxu1 %v1249_v30 }
  0x55   : > { %975 = vmatprep.mubr.msk.bf16.mxu0 %vm435_vm0, %v1250_v31  ;;  %983 = vmatprep.mubr.msk.bf16.mxu1 %vm435_vm0, %v1252_v32 }
  0x5c   : > { %556 = vmatmul.mubr.bf16.gmra.mxu0 %v1254_v33  ;;  %620 = vmatmul.mubr.bf16.gmra.mxu1 %v1255_v34 }
  0x5d   : > { %976 = vmatprep.mubr.msk.bf16.mxu0 %vm435_vm0, %v1256_v35  ;;  %984 = vmatprep.mubr.msk.bf16.mxu1 %vm435_vm0, %v1258_v36 }
  0x64   : > { %564 = vmatmul.mubr.bf16.gmra.mxu0 %v1260_v37  ;;  %628 = vmatmul.mubr.bf16.gmra.mxu1 %v1261_v38 }
  0x65   : > { %977 = vmatprep.mubr.msk.bf16.mxu0 %vm435_vm0, %v1262_v39  ;;  %985 = vmatprep.mubr.msk.bf16.mxu1 %vm435_vm0, %v1264_v40 }
  0x6c   : > { %572 = vmatmul.mubr.bf16.gmra.mxu0 %v1266_v41  ;;  %636 = vmatmul.mubr.bf16.gmra.mxu1 %v1267_v42 }
  0x6d   : > { %978 = vmatprep.mubr.msk.bf16.mxu0 %vm435_vm0, %v1268_v43  ;;  %986 = vmatprep.mubr.msk.bf16.mxu1 %vm435_vm0, %v1270_v44 }
  0x74   : > { %580 = vmatmul.mubr.bf16.gmra.mxu0 %v1272_v45  ;;  %644 = vmatmul.mubr.bf16.gmra.mxu1 %v1273_v46 }
  0xfc   : > { %v525_v48 = vpop.f32.mrf.mxu0  ;;  %v589_v49 = vpop.f32.mrf.mxu1 }
  0xfd   : > { %v526_v52 = vadd.f32 %v1496_v47, %v525_v48  ;;  %v590_v53 = vadd.f32 %v1496_v47, %v589_v49 }
  0xfe   : > { %v527_v50 = vpop.f32.mrf.mxu0  ;;  %v591_v51 = vpop.f32.mrf.mxu1 }
  0xff   : > { %v652_v60 = vmax.f32 %v526_v52, 0.0  ;;  %v668_v61 = vmax.f32 %v590_v53, 0.0 }
 0x100   : > { %v528_v54 = vpop.f32.mrf.mxu0  ;;  %v592_v55 = vpop.f32.mrf.mxu1 }
 0x101   : > { %v529_v56 = vadd.f32 %v1496_v47, %v528_v54  ;;  %v593_v57 = vadd.f32 %v1496_v47, %v592_v55 }
 0x102   : > { %v530_v58 = vpop.f32.mrf.mxu0  ;;  %v594_v59 = vpop.f32.mrf.mxu1 }
 0x103   : > { %v653_v62 = vmax.f32 %v529_v56, 0.0  ;;  %v669_v63 = vmax.f32 %v593_v57, 0.0 }
 0x104   : > { %v533_v0 = vpop.f32.mrf.mxu0  ;;  %v597_v1 = vpop.f32.mrf.mxu1 }
 0x105   : > { %v1061_v2 = vpack.c.bf16 %v653_v62, %v652_v60  ;;  %v1101_v3 = vpack.c.bf16 %v669_v63, %v668_v61  ;;  %v534_v6 = vadd.f32 %v1496_v47, %v533_v0  ;;  %v598_v7 = vadd.f32 %v1496_v47, %v597_v1 }
 0x106   : > { %v535_v4 = vpop.f32.mrf.mxu0  ;;  %v599_v5 = vpop.f32.mrf.mxu1 }
 0x107   : > { %1062 = vst [vmem:[%s1505_s8] sm:$0xff] %v1061_v2   ;;  %1145 = vst [vmem:[%s1505_s8 + $0x40] sm:$0xff] %v1101_v3   ;;  %v654_v14 = vmax.f32 %v534_v6, 0.0  ;;  %v670_v15 = vmax.f32 %v598_v7, 0.0 }
 0x108   : > { %v536_v8 = vpop.f32.mrf.mxu0  ;;  %v600_v9 = vpop.f32.mrf.mxu1 }
 0x109   : > { %v537_v10 = vadd.f32 %v1496_v47, %v536_v8  ;;  %v601_v11 = vadd.f32 %v1496_v47, %v600_v9 }
 0x10a   : > { %v538_v12 = vpop.f32.mrf.mxu0  ;;  %v602_v13 = vpop.f32.mrf.mxu1 }
 0x10b   : > { %v655_v16 = vmax.f32 %v537_v10, 0.0  ;;  %v671_v17 = vmax.f32 %v601_v11, 0.0 }
 0x10c   : > { %v541_v18 = vpop.f32.mrf.mxu0  ;;  %v605_v19 = vpop.f32.mrf.mxu1 }
 0x10d   : > { %v1066_v20 = vpack.c.bf16 %v655_v16, %v654_v14  ;;  %v1106_v21 = vpack.c.bf16 %v671_v17, %v670_v15  ;;  %v542_v24 = vadd.f32 %v1496_v47, %v541_v18  ;;  %v606_v25 = vadd.f32 %v1496_v47, %v605_v19 }
 0x10e   : > { %v543_v22 = vpop.f32.mrf.mxu0  ;;  %v607_v23 = vpop.f32.mrf.mxu1 }
 0x10f   : > { %1138 = vst [vmem:[%s1505_s8 + $0x8] sm:$0xff] %v1066_v20   ;;  %1146 = vst [vmem:[%s1505_s8 + $0x48] sm:$0xff] %v1106_v21   ;;  %v656_v32 = vmax.f32 %v542_v24, 0.0  ;;  %v672_v33 = vmax.f32 %v606_v25, 0.0 }
 0x110   : > { %v544_v26 = vpop.f32.mrf.mxu0  ;;  %v608_v27 = vpop.f32.mrf.mxu1 }
 0x111   : > { %v545_v28 = vadd.f32 %v1496_v47, %v544_v26  ;;  %v609_v29 = vadd.f32 %v1496_v47, %v608_v27 }
 0x112   : > { %v546_v30 = vpop.f32.mrf.mxu0  ;;  %v610_v31 = vpop.f32.mrf.mxu1 }
 0x113   : > { %v657_v34 = vmax.f32 %v545_v28, 0.0  ;;  %v673_v35 = vmax.f32 %v609_v29, 0.0 }
 0x114   : > { %v549_v36 = vpop.f32.mrf.mxu0  ;;  %v613_v37 = vpop.f32.mrf.mxu1 }
 0x115   : > { %v1071_v38 = vpack.c.bf16 %v657_v34, %v656_v32  ;;  %v1111_v39 = vpack.c.bf16 %v673_v35, %v672_v33  ;;  %v550_v42 = vadd.f32 %v1496_v47, %v549_v36  ;;  %v614_v43 = vadd.f32 %v1496_v47, %v613_v37 }
 0x116   : > { %v551_v40 = vpop.f32.mrf.mxu0  ;;  %v615_v41 = vpop.f32.mrf.mxu1 }
 0x117   : > { %1139 = vst [vmem:[%s1505_s8 + $0x10] sm:$0xff] %v1071_v38   ;;  %1147 = vst [vmem:[%s1505_s8 + $0x50] sm:$0xff] %v1111_v39   ;;  %v658_v51 = vmax.f32 %v550_v42, 0.0  ;;  %v674_v52 = vmax.f32 %v614_v43, 0.0 }
 0x118   : > { %v552_v44 = vpop.f32.mrf.mxu0  ;;  %v616_v45 = vpop.f32.mrf.mxu1 }
 0x119   : > { %v553_v46 = vadd.f32 %v1496_v47, %v552_v44  ;;  %v617_v48 = vadd.f32 %v1496_v47, %v616_v45 }
 0x11a   : > { %v554_v49 = vpop.f32.mrf.mxu0  ;;  %v618_v50 = vpop.f32.mrf.mxu1 }
 0x11b   : > { %v659_v53 = vmax.f32 %v553_v46, 0.0  ;;  %v675_v54 = vmax.f32 %v617_v48, 0.0 }
 0x11c   : > { %v557_v55 = vpop.f32.mrf.mxu0  ;;  %v621_v56 = vpop.f32.mrf.mxu1 }
 0x11d   : > { %v1076_v57 = vpack.c.bf16 %v659_v53, %v658_v51  ;;  %v1116_v58 = vpack.c.bf16 %v675_v54, %v674_v52  ;;  %v558_v61 = vadd.f32 %v1496_v47, %v557_v55  ;;  %v622_v62 = vadd.f32 %v1496_v47, %v621_v56 }
 0x11e   : > { %v559_v59 = vpop.f32.mrf.mxu0  ;;  %v623_v60 = vpop.f32.mrf.mxu1 }
 0x11f   : > { %1140 = vst [vmem:[%s1505_s8 + $0x18] sm:$0xff] %v1076_v57   ;;  %1148 = vst [vmem:[%s1505_s8 + $0x58] sm:$0xff] %v1116_v58   ;;  %v660_v5 = vmax.f32 %v558_v61, 0.0  ;;  %v676_v6 = vmax.f32 %v622_v62, 0.0 }
 0x120   : > { %v560_v63 = vpop.f32.mrf.mxu0  ;;  %v624_v0 = vpop.f32.mrf.mxu1 }
 0x121   : > { %v561_v1 = vadd.f32 %v1496_v47, %v560_v63  ;;  %v625_v2 = vadd.f32 %v1496_v47, %v624_v0 }
 0x122   : > { %v562_v3 = vpop.f32.mrf.mxu0  ;;  %v626_v4 = vpop.f32.mrf.mxu1 }
 0x123   : > { %v661_v7 = vmax.f32 %v561_v1, 0.0  ;;  %v677_v8 = vmax.f32 %v625_v2, 0.0 }
 0x124   : > { %v565_v9 = vpop.f32.mrf.mxu0  ;;  %v629_v10 = vpop.f32.mrf.mxu1 }
 0x125   : > { %v1081_v11 = vpack.c.bf16 %v661_v7, %v660_v5  ;;  %v1121_v12 = vpack.c.bf16 %v677_v8, %v676_v6  ;;  %v566_v15 = vadd.f32 %v1496_v47, %v565_v9  ;;  %v630_v16 = vadd.f32 %v1496_v47, %v629_v10 }
 0x126   : > { %v567_v13 = vpop.f32.mrf.mxu0  ;;  %v631_v14 = vpop.f32.mrf.mxu1 }
 0x127   : > { %1141 = vst [vmem:[%s1505_s8 + $0x20] sm:$0xff] %v1081_v11   ;;  %1149 = vst [vmem:[%s1505_s8 + $0x60] sm:$0xff] %v1121_v12   ;;  %v662_v23 = vmax.f32 %v566_v15, 0.0  ;;  %v678_v24 = vmax.f32 %v630_v16, 0.0 }
 0x128   : > { %v568_v17 = vpop.f32.mrf.mxu0  ;;  %v632_v18 = vpop.f32.mrf.mxu1 }
 0x129   : > { %v569_v19 = vadd.f32 %v1496_v47, %v568_v17  ;;  %v633_v20 = vadd.f32 %v1496_v47, %v632_v18 }
 0x12a   : > { %v570_v21 = vpop.f32.mrf.mxu0  ;;  %v634_v22 = vpop.f32.mrf.mxu1 }
 0x12b   : > { %v663_v25 = vmax.f32 %v569_v19, 0.0  ;;  %v679_v26 = vmax.f32 %v633_v20, 0.0 }
 0x12c   : > { %v573_v27 = vpop.f32.mrf.mxu0  ;;  %v637_v28 = vpop.f32.mrf.mxu1 }
 0x12d   : > { %v1086_v29 = vpack.c.bf16 %v663_v25, %v662_v23  ;;  %v1126_v30 = vpack.c.bf16 %v679_v26, %v678_v24  ;;  %v574_v33 = vadd.f32 %v1496_v47, %v573_v27  ;;  %v638_v34 = vadd.f32 %v1496_v47, %v637_v28 }
 0x12e   : > { %v575_v31 = vpop.f32.mrf.mxu0  ;;  %v639_v32 = vpop.f32.mrf.mxu1 }
 0x12f   : > { %1142 = vst [vmem:[%s1505_s8 + $0x28] sm:$0xff] %v1086_v29   ;;  %1150 = vst [vmem:[%s1505_s8 + $0x68] sm:$0xff] %v1126_v30   ;;  %v664_v41 = vmax.f32 %v574_v33, 0.0  ;;  %v680_v42 = vmax.f32 %v638_v34, 0.0 }
 0x130   : > { %v576_v35 = vpop.f32.mrf.mxu0  ;;  %v640_v36 = vpop.f32.mrf.mxu1 }
 0x131   : > { %v577_v37 = vadd.f32 %v1496_v47, %v576_v35  ;;  %v641_v38 = vadd.f32 %v1496_v47, %v640_v36 }
 0x132   : > { %v578_v39 = vpop.f32.mrf.mxu0  ;;  %v642_v40 = vpop.f32.mrf.mxu1 }
 0x133   : > { %v665_v43 = vmax.f32 %v577_v37, 0.0  ;;  %v681_v44 = vmax.f32 %v641_v38, 0.0 }
 0x134   : > { %v581_v45 = vpop.f32.mrf.mxu0  ;;  %v645_v46 = vpop.f32.mrf.mxu1 }
 0x135   : > { %v1091_v48 = vpack.c.bf16 %v665_v43, %v664_v41  ;;  %v1131_v49 = vpack.c.bf16 %v681_v44, %v680_v42  ;;  %v582_v52 = vadd.f32 %v1496_v47, %v581_v45  ;;  %v646_v53 = vadd.f32 %v1496_v47, %v645_v46 }
 0x136   : > { %v583_v50 = vpop.f32.mrf.mxu0  ;;  %v647_v51 = vpop.f32.mrf.mxu1 }
 0x137   : > { %1143 = vst [vmem:[%s1505_s8 + $0x30] sm:$0xff] %v1091_v48   ;;  %1151 = vst [vmem:[%s1505_s8 + $0x70] sm:$0xff] %v1131_v49   ;;  %v666_v60 = vmax.f32 %v582_v52, 0.0  ;;  %v682_v61 = vmax.f32 %v646_v53, 0.0 }
 0x138   : > { %v584_v54 = vpop.f32.mrf.mxu0  ;;  %v648_v55 = vpop.f32.mrf.mxu1 }
 0x139   : > { %v585_v56 = vadd.f32 %v1496_v47, %v584_v54  ;;  %v649_v57 = vadd.f32 %v1496_v47, %v648_v55 }
 0x13a   : > { %v586_v58 = vpop.f32.mrf.mxu0  ;;  %v650_v59 = vpop.f32.mrf.mxu1 }
 0x13b   : > { %v667_v62 = vmax.f32 %v585_v56, 0.0  ;;  %v683_v63 = vmax.f32 %v649_v57, 0.0 }
 0x13d   : > { %v1096_v47 = vpack.c.bf16 %v667_v62, %v666_v60  ;;  %v1136_v0 = vpack.c.bf16 %v683_v63, %v682_v61 }
 0x13f   : > { %1144 = vst [vmem:[%s1505_s8 + $0x38] sm:$0xff] %v1096_v47   ;;  %1152 = vst [vmem:[%s1505_s8 + $0x78] sm:$0xff] %v1136_v0  }
 0x140   : > { %1287 = shalt.err (!%p1284_p3)
}
 0x141   : > { %s1288_s27 = scalar_lea.hbm %s1554_s19, 2048  ;;  %s1292_s30 = scalar_lea.hbm %s1605_s3, 4096 }
 0x142   : > { %p1289_p4 = scmp.ne.s32.totalorder %s1554_s19, %s1288_s27  ;;  %p1293_p9 = scmp.lt.s32.totalorder %s1554_s19, %s1605_s3 }
 0x143   : > { %p1294_p10 = scmp.lt.s32.totalorder %s1292_s30, %s1288_s27 }
 0x144   : > { %p1290_p7 = pnand %p1289_p4, %p1399_p5 }
 0x145   : > { %p1295_p11 = por %p1294_p10, %p1293_p9 }
 0x146   : > { %p1291_p8 = pneg %p1290_p7 }
 0x148   : > { %p1296_p12 = pnand %p1295_p11, %p1291_p8 }
 0x14a   : > { %1299 = shalt.err (!%p1296_p12)
}
 0x14b   : > { %s1339_s6 = smov 64   ;;  %s1340_s7 = smov 4  }
 0x14c   : > { %1173 = dma.vmem_to_hbm [thread:$0]  (%p1399_p5), %s1556_s10, 2048, %s1554_s19, %s1562_s16, %s1339_s6, %s1339_s6, %s1340_s7  }
 0x14d PF: > { %p1179_p13 = scmp.ge.s32.totalorder %s1334_s15, 2  ;;  %s873_s8 = sand.u32 1, %s1322_s12  }
 0x14e   : > { %s874_s9 = scalar_lea.sflag [#allocation3], %s873_s8 }
 0x14f   : > { %p1176_p0 = pnand %p1179_p13, %p1403_p6 }
 0x151   : > { %p1177_p1 = pneg %p1176_p0 }
 0x153   : > { %1317 = dma.done.wait (%p1177_p1), %s874_s9, 2048  }
 0x154   : > { %1319 = vsyncadd (%p1177_p1), %s874_s9, 4294965248  ;;  %p13_p2 = scmp.ge.s32.totalorder %s1386_s18, 4   ;;  %s1608_s12 = smov %s1326_s13 }
 0x155   : > { %s1609_s13 = smov %s1330_s14  ;;  %s1610_s14 = smov %s1397_s21 }
 0x156   : > { %s1611_s15 = smov %s1386_s18  ;;  %15 = sbr.rel (!%p13_p2) target bundleno = 3 (0x3), region = 67 }
 0x15b   :  { %879 = vsyncpa [#allocation3], 1 }
 0x15c   :  { %881 = vsyncpa [#allocation3 + $0x1], 1 }

</bundles_post_ra>
